<compile_context>
chip_gen: v6e
topology: v6e:2x2x1
jax: 0.10.0
libtpu: 0.0.40
codegen_flags: <defaults>
</compile_context>

<pallas_src>
import jax
import jax.numpy as jnp
from jax.experimental import pallas as pl
from jax.experimental.pallas import tpu as pltpu

LANES = 128
SUBLANES = 8
_MIB = 1024 * 1024
# ~4 MiB blocks: large enough for the >=85%-of-HBM-roofline regime on all three
# generations; 3 arrays x 2 pipeline buffers = 24 MiB + 4 MiB headroom, declared
# explicitly below so v5e's 16 MiB default scoped limit is raised and v7x's
# smaller 64 MiB physical VMEM is respected.
_TARGET_BLOCK_BYTES = 4 * _MIB
_VMEM_LIMIT_BYTES = 3 * 2 * _TARGET_BLOCK_BYTES + 4 * _MIB


def _params(dimension_semantics):
    return pltpu.CompilerParams(
        dimension_semantics=dimension_semantics,
        vmem_limit_bytes=_VMEM_LIMIT_BYTES,
    )


def _make_kernel(scale):
    # `scale` is a static Python scalar (it is a module __init__ arg in the
    # torch spec), so it lowers to a jaxpr literal -> no captured constants and
    # the multiply is elided entirely when scale == 1.
    # TODO(synk): feed a traced scaling_factor via an SMEM (1,1) input if a
    # dynamic (jitted) scale is ever required.
    def kernel(a_ref, b_ref, o_ref):
        s = a_ref[...] + b_ref[...]          # numpy broadcasting covers the e2 path
        if scale != 1:
            s = s * scale
        o_ref[...] = s.astype(o_ref.dtype)
    return kernel


def _cost(n_out, extra_in_elems, itemsize, scale):
    # e1 read + out write (+ e2 read once thanks to its VMEM residency).
    return pl.CostEstimate(
        flops=int(n_out * (1 if scale == 1 else 2)),
        transcendentals=0,
        bytes_accessed=int((2 * n_out + extra_in_elems) * itemsize),
    )


def _pick_tile_rows(rows, itemsize):
    """Rows per block: ~_TARGET_BLOCK_BYTES, multiple of 8, or all rows if fewer."""
    tile = _TARGET_BLOCK_BYTES // (LANES * itemsize)
    tile = max(SUBLANES, (tile // SUBLANES) * SUBLANES)
    return rows if rows <= tile else tile


def _same_shape_add(e1, e2, kernel, scale, dtype, itemsize):
    n = int(e1.size)
    a_flat = e1.reshape(-1)
    b_flat = e2.reshape(-1)
    rem = n % LANES
    n_main = n - rem

    pieces = []
    if n_main:
        rows = n_main // LANES
        tile_rows = _pick_tile_rows(rows, itemsize)
        a2 = (a_flat if rem == 0 else a_flat[:n_main]).reshape(rows, LANES)
        b2 = (b_flat if rem == 0 else b_flat[:n_main]).reshape(rows, LANES)
        out2 = pl.pallas_call(
            kernel,
            out_shape=jax.ShapeDtypeStruct((rows, LANES), dtype),
            grid_spec=pltpu.PrefetchScalarGridSpec(
                num_scalar_prefetch=0,
                grid=(pl.cdiv(rows, tile_rows),),
                in_specs=[
                    pl.BlockSpec((tile_rows, LANES), lambda i: (i, 0)),
                    pl.BlockSpec((tile_rows, LANES), lambda i: (i, 0)),
                ],
                out_specs=pl.BlockSpec((tile_rows, LANES), lambda i: (i, 0)),
            ),
            compiler_params=_params(("parallel",)),
            cost_estimate=_cost(n_main, n_main, itemsize, scale),
        )(a2, b2)
        pieces.append(out2.reshape(-1))
    if rem:
        # <128-element tail: plain jnp; avoids padding both full inputs through HBM.
        tail = a_flat[n_main:] + b_flat[n_main:]
        if scale != 1:
            tail = tail * scale
        pieces.append(tail.astype(dtype))

    return pieces[0] if len(pieces) == 1 else jnp.concatenate(pieces)


def _broadcast_add(e1, e2, kernel, scale, dtype, itemsize):
    B = e1.shape[0]
    n1 = int(e1.size)
    n2 = int(e2.size)

    if n2 % LANES == 0:
        rows = n2 // LANES
        per_sample_bytes = rows * LANES * itemsize
        tile_rows = _pick_tile_rows(rows, itemsize)
        if tile_rows >= rows:
            # Small per-sample slab (late VGG layers): pack several samples per
            # block so each grid step still moves ~_TARGET_BLOCK_BYTES.
            tile_rows = rows
            batch_tile = int(min(B, max(1, _TARGET_BLOCK_BYTES // per_sample_bytes)))
        else:
            batch_tile = 1
        a3 = e1.reshape(B, rows, LANES)
        b2 = e2.reshape(rows, LANES)
        # Batch is the innermost grid axis and e2's index_map ignores it, so the
        # e2 row-tile stays resident in VMEM across the batch loop; both axes
        # are "parallel" so v7x megacore can shard the grid across TensorCores.
        grid = (pl.cdiv(rows, tile_rows), pl.cdiv(B, batch_tile))
        out = pl.pallas_call(
            kernel,
            out_shape=jax.ShapeDtypeStruct((B, rows, LANES), dtype),
            grid_spec=pltpu.PrefetchScalarGridSpec(
                num_scalar_prefetch=0,
                grid=grid,
                in_specs=[
                    pl.BlockSpec((batch_tile, tile_rows, LANES),
                                 lambda i, b: (b, i, 0)),
                    pl.BlockSpec((tile_rows, LANES),
                                 lambda i, b: (i, 0)),
                ],
                out_specs=pl.BlockSpec((batch_tile, tile_rows, LANES),
                                       lambda i, b: (b, i, 0)),
            ),
            compiler_params=_params(("parallel", "parallel")),
            cost_estimate=_cost(n1, n2, itemsize, scale),
        )(a3, b2)
        return out

    # Ragged per-sample element count (never hit by VGG activations): keep e2
    # resident and use full-lane-extent blocks instead of materializing the
    # batch-sized broadcast in HBM.
    row_bytes = n2 * itemsize
    if B * row_bytes <= _TARGET_BLOCK_BYTES:
        batch_tile = B
    elif SUBLANES * row_bytes <= _TARGET_BLOCK_BYTES:
        batch_tile = (_TARGET_BLOCK_BYTES // row_bytes) // SUBLANES * SUBLANES
    else:
        # TODO(synk): huge ragged per-sample slab; let XLA fuse the broadcast
        # (single HBM pass) rather than faking an unaligned Pallas tiling.
        out = e1 + e2[None]
        if scale != 1:
            out = out * scale
        return out.astype(dtype)

    a2 = e1.reshape(B, n2)
    b2 = e2.reshape(1, n2)
    out = pl.pallas_call(
        kernel,
        out_shape=jax.ShapeDtypeStruct((B, n2), dtype),
        grid_spec=pltpu.PrefetchScalarGridSpec(
            num_scalar_prefetch=0,
            grid=(pl.cdiv(B, batch_tile),),
            in_specs=[
                pl.BlockSpec((batch_tile, n2), lambda b: (b, 0)),
                pl.BlockSpec((1, n2), lambda b: (0, 0)),
            ],
            out_specs=pl.BlockSpec((batch_tile, n2), lambda b: (b, 0)),
        ),
        compiler_params=_params(("parallel",)),
        cost_estimate=_cost(n1, n2, itemsize, scale),
    )(a2, b2)
    return out


def homomorphic_add(encrypted1, encrypted2, scaling_factor=1):
    """Pallas TPU equivalent of HomomorphicAdd.forward (static scaling_factor)."""
    dtype = encrypted1.dtype
    orig_shape = encrypted1.shape
    itemsize = jnp.dtype(dtype).itemsize
    kernel = _make_kernel(scaling_factor)
    # TODO(synk): integer inputs with a non-integer scaling_factor follow jnp
    # (not torch) type promotion; VGG activations are float so this never fires.

    if encrypted1.shape != encrypted2.shape:
        # torch: encrypted2.unsqueeze(0).expand_as(encrypted1)
        assert tuple(orig_shape[1:]) == tuple(encrypted2.shape), (
            "encrypted2 must match encrypted1's trailing dims for broadcast")
        out = _broadcast_add(encrypted1, encrypted2, kernel, scaling_factor,
                             dtype, itemsize)
        return out.reshape(orig_shape)

    out = _same_shape_add(encrypted1, encrypted2, kernel, scaling_factor,
                          dtype, itemsize)
    return out.reshape(orig_shape)


if __name__ == "__main__":
    key = jax.random.PRNGKey(0)
    k1, k2, k3, k4, k5, k6 = jax.random.split(key, 6)

    # Small NCHW "encrypted" activations: batch=2, channels=4, spatial=16x16.
    x1 = jax.random.normal(k1, (2, 4, 16, 16), dtype=jnp.float32)
    x2 = jax.random.normal(k2, (2, 4, 16, 16), dtype=jnp.float32)
    x2_b = jax.random.normal(k3, (4, 16, 16), dtype=jnp.float32)  # missing batch dim

    # Same-shape path, module-default scaling_factor=1 (multiply elided).
    out = homomorphic_add(x1, x2, 1)
    jax.block_until_ready(out)
    ref = x1 + x2
    assert out.shape == ref.shape, "shape mismatch (same-shape path)"
    assert jnp.allclose(out, ref, atol=1e-6), "mismatch (same-shape path)"

    # Broadcast path (samples packed into one block), non-unit scaling factor.
    out_b = homomorphic_add(x1, x2_b, 2.5)
    jax.block_until_ready(out_b)
    ref_b = (x1 + x2_b[None]) * 2.5
    assert jnp.allclose(out_b, ref_b, atol=1e-6), "mismatch (broadcast path)"

    # Ragged same-shape tail: 128-aligned prefix through the kernel, tail in jnp.
    y1 = jax.random.normal(k4, (2, 3, 50), dtype=jnp.float32)   # 300 elements
    y2 = jax.random.normal(k5, (2, 3, 50), dtype=jnp.float32)
    out_r = homomorphic_add(y1, y2, 0.5)
    jax.block_until_ready(out_r)
    assert jnp.allclose(out_r, (y1 + y2) * 0.5, atol=1e-6), "mismatch (ragged path)"

    # Ragged broadcast: full-lane-extent block, resident e2, no broadcast_to.
    y2_b = jax.random.normal(k6, (3, 50), dtype=jnp.float32)
    out_rb = homomorphic_add(y1, y2_b, 1)
    jax.block_until_ready(out_rb)
    assert jnp.allclose(out_rb, y1 + y2_b[None], atol=1e-6), "mismatch (ragged bcast)"

    print("KERNEL_OK")
</pallas_src>

<mosaic_0001>
module attributes {stable_mosaic.version = 11 : i64} {
  func.func @kernel(%arg0: i32, %arg1: memref<16x128xf32, #tpu.memory_space<vmem>>, %arg2: memref<16x128xf32, #tpu.memory_space<vmem>>, %arg3: memref<16x128xf32, #tpu.memory_space<vmem>>) attributes {dimension_semantics = [#tpu.dimension_semantics<parallel>], iteration_bounds = array<i64: 1>, scalar_prefetch = 0 : i64, scratch_operands = 0 : i64, tpu.core_type = #tpu.core_type<tc>, window_params = [{transform_indices = @transform_0, window_bounds = array<i64: 16, 128>}, {transform_indices = @transform_1, window_bounds = array<i64: 16, 128>}, {transform_indices = @transform_2, window_bounds = array<i64: 16, 128>}]} {
    %c0 = arith.constant 0 : index
    %c0_0 = arith.constant 0 : index
    %0 = vector.load %arg1[%c0, %c0_0] : memref<16x128xf32, #tpu.memory_space<vmem>>, vector<16x128xf32>
    %c0_1 = arith.constant 0 : index
    %c0_2 = arith.constant 0 : index
    %1 = vector.load %arg2[%c0_1, %c0_2] : memref<16x128xf32, #tpu.memory_space<vmem>>, vector<16x128xf32>
    %2 = arith.addf %0, %1 : vector<16x128xf32>
    %c0_3 = arith.constant 0 : index
    %c0_4 = arith.constant 0 : index
    %3 = vector.load %arg3[%c0_3, %c0_4] : memref<16x128xf32, #tpu.memory_space<vmem>>, vector<16x128xf32>
    tpu.vector_store %arg3[%c0_3, %c0_4], %2 {strides = array<i32>} : memref<16x128xf32, #tpu.memory_space<vmem>>, vector<16x128xf32>,
    return
  }
  func.func @transform_0(%arg0: i32) -> (i32, i32) {
    %c0_i32 = arith.constant 0 : i32
    %c0_i32_0 = arith.constant 0 : i32
    return %arg0, %c0_i32 : i32, i32
  }
  func.func @transform_1(%arg0: i32) -> (i32, i32) {
    %c0_i32 = arith.constant 0 : i32
    %c0_i32_0 = arith.constant 0 : i32
    return %arg0, %c0_i32 : i32, i32
  }
  func.func @transform_2(%arg0: i32) -> (i32, i32) {
    %c0_i32 = arith.constant 0 : i32
    %c0_i32_0 = arith.constant 0 : i32
    return %arg0, %c0_i32 : i32, i32
  }
}

</mosaic_0001>

<bundles_post_ra>
// kernel: tpu_custom_call.1
= control target key start
LH: loop header
LB: loop body
LE: loop exit
PB: predicated region body
PF: predicated region fallthrough
CT: control target
= control target key end

     0   :  { %7 = vsyncpa [#allocation3], 0  ;;  %s175_s0 = inlined_call_operand.hbm [shape: f32[16,128], index: 0, kind: input, shape index: {}]   ;;  %s176_s1 = inlined_call_operand.hbm [shape: f32[16,128], index: 1, kind: input, shape index: {}]   ;;  %s177_s2 = inlined_call_operand.hbm [shape: f32[16,128], index: 2, kind: output, shape index: {}]  }
   0x1   :  { %8 = vsyncpa [#allocation6], 0 }
   0x2   :  { %9 = vsyncpa [#allocation4], 0  ;;  %s137_s9 = smov [#allocation2]  }
   0x3   :  { %s15_s10 = sshll.u32 %s137_s9, 4  ;;  %s16_s10 = int_to_ptr.vmem [resolvable:$true] %s15_s10 }
   0x4   :  { %s79_s11 = scalar_lea.vmem %s16_s10, 256  ;;  %p84_p1 = scmp.lt.s32.totalorder %s16_s10, %s16_s10 }
   0x5   :  { %p80_p0 = scmp.ne.s32.totalorder %s16_s10, %s79_s11  ;;  %p85_p2 = scmp.lt.s32.totalorder %s79_s11, %s79_s11 }
   0x7   :  { %p86_p3 = por %p85_p2, %p84_p1 }
   0x9   :  { %p87_p4 = pnand %p86_p3, %p80_p0 }
   0xb   :  { %90 = shalt.err (!%p87_p4)
}
   0xc   :  { %s138_s12 = smov 128   ;;  %s139_s13 = smov 8  }
   0xd   :  { %21 = dma.hbm_to_vmem [thread:$0]  %s175_s0, 256, %s16_s10, [#allocation3], %s138_s12, %s138_s12, %s139_s13  }
   0xe   :  { %s140_s16 = smov [#allocation5]  }
   0xf   :  { %s27_s17 = sshll.u32 %s140_s16, 4  ;;  %s28_s17 = int_to_ptr.vmem [resolvable:$true] %s27_s17 }
  0x10   :  { %s99_s18 = scalar_lea.vmem %s28_s17, 256  ;;  %p104_p6 = scmp.lt.s32.totalorder %s28_s17, %s28_s17 }
  0x11   :  { %p100_p5 = scmp.ne.s32.totalorder %s28_s17, %s99_s18  ;;  %p105_p7 = scmp.lt.s32.totalorder %s99_s18, %s99_s18 }
  0x13   :  { %p106_p8 = por %p105_p7, %p104_p6 }
  0x15   :  { %p107_p9 = pnand %p106_p8, %p100_p5 }
  0x17   :  { %110 = shalt.err (!%p107_p9)
}
  0x18   :  { %33 = dma.hbm_to_vmem [thread:$0]  %s176_s1, 256, %s28_s17, [#allocation6], %s138_s12, %s138_s12, %s139_s13  }
  0x19   :  { %131 = dma.done.wait [#allocation3], 256  }
  0x1a   :  { %132 = vsyncadd [#allocation3], 4294967040 }
  0x1b   :  { %133 = dma.done.wait [#allocation6], 256  }
  0x1c   :  { %134 = vsyncadd [#allocation6], 4294967040  ;;  %s141_s0 = smov [#allocation7]   ;;  %v40_v0 = vld [vmem:[#allocation2] sm:$0xff]  ;;  %v42_v1 = vld [vmem:[#allocation5] sm:$0xff] }
  0x1d   :  { %s53_s21 = sshll.u32 %s141_s0, 4  ;;  %v41_v2 = vld [vmem:[#allocation2 + $0x8] sm:$0xff]  ;;  %v44_v3 = vadd.f32 %v42_v1, %v40_v0  ;;  %v43_v4 = vld [vmem:[#allocation5 + $0x8] sm:$0xff]  ;;  %s54_s21 = int_to_ptr.vmem [resolvable:$true] %s53_s21 }
  0x1e   :  { %v45_v5 = vadd.f32 %v43_v4, %v41_v2  ;;  %s111_s22 = scalar_lea.vmem %s54_s21, 256  ;;  %p116_p11 = scmp.lt.s32.totalorder %s54_s21, %s54_s21 }
  0x1f   :  { %46 = vst [vmem:[#allocation7] sm:$0xff] %v44_v3  ;;  %p112_p10 = scmp.ne.s32.totalorder %s54_s21, %s111_s22  ;;  %p117_p12 = scmp.lt.s32.totalorder %s111_s22, %s111_s22 }
  0x20   :  { %47 = vst [vmem:[#allocation7 + $0x8] sm:$0xff] %v45_v5 }
  0x21   :  { %p118_p13 = por %p117_p12, %p116_p11 }
  0x23   :  { %p119_p0 = pnand %p118_p13, %p112_p10 }
  0x25   :  { %122 = shalt.err (!%p119_p0)
}
  0x26   :  { %59 = dma.vmem_to_hbm [thread:$0]  %s54_s21, 256, %s177_s2, [#allocation4], %s138_s12, %s138_s12, %s139_s13  }
  0x27   :  { %135 = dma.done.wait [#allocation4], 256  }
  0x28   :  { %136 = vsyncadd [#allocation4], 4294967040 }
  0x29   :  { %63 = vsyncpa [#allocation3], 1 }
  0x2a   :  { %64 = vsyncpa [#allocation6], 1 }
  0x2b   :  { %65 = vsyncpa [#allocation4], 1 }

</bundles_post_ra>
